<compile_context>
chip_gen: v6e
topology: v6e:2x2x1
jax: 0.10.0
libtpu: 0.0.40
codegen_flags: <defaults>
</compile_context>

<pallas_src>
import functools
import math

import jax
import jax.numpy as jnp
from jax.experimental import pallas as pl
from jax.experimental.pallas import tpu as pltpu

# ---------------------------------------------------------------------------
# Module "parameters" (deterministic, from __init__ defaults)
# ---------------------------------------------------------------------------
WEIGHTS = [1, 2, 5, 10, 15, 20, 25, 30]
THRESHOLDS_RAW = [1, 5, 10, 20, 30, 40, 50, 90]
MAX_VALUE = 90
IF_LOG = False
MSE_W = 1.0
MAE_W = 1.0

if IF_LOG:
    _log_max = math.log(1.0 + MAX_VALUE)
    THRESHOLDS = [math.log(1.0 + t) / _log_max for t in THRESHOLDS_RAW]
else:
    THRESHOLDS = [t / MAX_VALUE for t in THRESHOLDS_RAW]

_LANES = 128
_SUBLANES = 8
_ROW_ALIGN = _SUBLANES * _LANES      # kernel consumes a 1024-aligned prefix
_DEFAULT_TILE_ROWS = 8192            # 4 MiB f32 per input block


# ---------------------------------------------------------------------------
# Shared math (used by the kernel, the ragged tail, and nothing else)
# ---------------------------------------------------------------------------
def _precip_weights(y_true_clipped):
    """Threshold -> weight assignment.

    Iterates the thresholds in *reverse* order comparing against the original
    clipped y_true.  Equivalent to the sequential in-place PyTorch loop
    (smallest matching threshold wins; y_true == 1.0 keeps weight 1.0) because
    once the PyTorch loop assigns a weight (>= 1) it is never overwritten by a
    later threshold (<= 1).  The reverse form makes the 8 compares independent
    of the select chain -> better VLIW packing on the VALU slots.
    """
    w = y_true_clipped
    for th, wt in zip(reversed(THRESHOLDS), reversed(WEIGHTS)):
        w = jnp.where(y_true_clipped < jnp.float32(th), jnp.float32(wt), w)
    return w


def _fused_contrib(y_pre, y_true):
    """w*|d|*(MSE_W*|d| + MAE_W)  ==  MSE_W*w*d^2 + MAE_W*w*|d|   (f32)."""
    y_true = jnp.clip(y_true.astype(jnp.float32), 0.0, 1.0)
    y_pre = y_pre.astype(jnp.float32)
    w = _precip_weights(y_true)
    ad = jnp.abs(y_pre - y_true)
    return (w * ad) * (jnp.float32(MSE_W) * ad + jnp.float32(MAE_W))


# ---------------------------------------------------------------------------
# Kernel
# ---------------------------------------------------------------------------
def _bmsae_kernel(y_pre_ref, y_true_ref, out_ref, *,
                  tile_rows, tiles_per_chunk, rows_valid):
    """Accumulate the fused weighted-error numerator into an (8,128) block."""
    p = pl.program_id(0)     # parallel chunk (one per TensorCore on v7x)
    i = pl.program_id(1)     # reduction over row tiles within the chunk

    @pl.when(i == 0)
    def _():
        out_ref[...] = jnp.zeros_like(out_ref)

    contrib = _fused_contrib(y_pre_ref[...], y_true_ref[...])

    def _reduce_to_acc(x):
        # (tile_rows, 128) -> (tile_rows//8, 8, 128) is a free layout reshape;
        # the axis-0 sum is one VPU add per (8,128) vreg group.
        return jnp.sum(x.reshape(tile_rows // _SUBLANES, _SUBLANES, _LANES),
                       axis=0)

    tile_start = (p * tiles_per_chunk + i) * tile_rows      # scalar (SMEM)
    needs_mask = tile_start + tile_rows > rows_valid

    # Fast path: interior block -> no iota / compare / select per element.
    @pl.when(jnp.logical_not(needs_mask))
    def _():
        out_ref[...] += _reduce_to_acc(contrib)

    # Slow path: partial last block or clamped duplicate -> mask invalid rows
    # (masking the final product keeps garbage/NaN fill from leaking in).
    @pl.when(needs_mask)
    def _():
        row = jax.lax.broadcasted_iota(jnp.int32, (tile_rows, _LANES), 0)
        masked = jnp.where(tile_start + row < rows_valid, contrib,
                           jnp.float32(0.0))
        out_ref[...] += _reduce_to_acc(masked)


# ---------------------------------------------------------------------------
# Wrapper
# ---------------------------------------------------------------------------
def _detect_num_tensorcores(default=2):
    # The 2-chunk "parallel" split only pays off on dual-TensorCore chips
    # (v7x).  On v5e/v6e it is just a sequential loop with at most one extra
    # fully-masked step (no duplicate DMA, see in_map), so a fallback of 2 is
    # harmless when the core count cannot be detected.
    try:
        info = pltpu.get_tpu_info()
        for attr in ("num_cores", "core_count", "tensorcore_count",
                     "num_tensorcores"):
            n = getattr(info, attr, None)
            if n:
                return max(1, min(2, int(n)))
    except Exception:
        pass
    return default


def bmsae_loss(y_pre, y_true, *, tile_rows=_DEFAULT_TILE_ROWS, num_chunks=None):
    """Pallas implementation of BMSAELoss.forward.  Returns a scalar float32.

    Note: unlike the PyTorch module, the in-place clipping of y_true is not
    reflected back into the caller's buffer (JAX arrays are immutable).
    """
    assert y_pre.shape == y_true.shape
    n_valid = 1
    for d in y_pre.shape:
        n_valid *= int(d)
    assert n_valid > 0

    def passthrough(x):
        # bf16 passes through (kernel promotes to f32); everything else -> f32.
        if x.dtype.name not in ("bfloat16", "float32"):
            x = x.astype(jnp.float32)
        return x.reshape(-1)

    pre_flat = passthrough(y_pre)
    true_flat = passthrough(y_true)

    # Only the 1024-aligned prefix goes through the kernel (rows % 8 == 0 keeps
    # the sublane-group reduce legal); the <=1023-element tail is folded in
    # with a tiny pure-JAX reduction instead of jnp.pad-ing full input copies.
    n_main = (n_valid // _ROW_ALIGN) * _ROW_ALIGN
    tail_sum = jnp.float32(0.0)
    if n_main < n_valid:
        tail_sum = jnp.sum(_fused_contrib(pre_flat[n_main:], true_flat[n_main:]))

    if n_main == 0:
        # Input smaller than one (8,128) tile: pure JAX beats a kernel launch.
        return tail_sum / jnp.float32(n_valid)

    rows = n_main // _LANES                       # multiple of 8
    slab_pre = pre_flat[:n_main].reshape(rows, _LANES)
    slab_true = true_flat[:n_main].reshape(rows, _LANES)

    # Tile / chunk geometry.
    tile_rows = max(_SUBLANES, (int(tile_rows) // _SUBLANES) * _SUBLANES)
    tile_rows = min(tile_rows, rows)
    tiles_total = pl.cdiv(rows, tile_rows)
    if num_chunks is None:
        num_chunks = _detect_num_tensorcores()
    num_chunks = max(1, min(int(num_chunks), tiles_total))
    tiles_per_chunk = pl.cdiv(tiles_total, num_chunks)
    last_block = tiles_total - 1

    def in_map(p, i):
        # Overflow steps of a short last chunk clamp to the block index of the
        # previous step, so Pallas skips the re-DMA; the step is fully masked
        # inside the kernel and contributes 0.
        return (jnp.minimum(p * tiles_per_chunk + i, last_block), 0)

    kernel = functools.partial(
        _bmsae_kernel,
        tile_rows=tile_rows,
        tiles_per_chunk=tiles_per_chunk,
        rows_valid=rows,
    )

    partials = pl.pallas_call(
        kernel,
        out_shape=jax.ShapeDtypeStruct((num_chunks * _SUBLANES, _LANES),
                                       jnp.float32),
        grid_spec=pltpu.PrefetchScalarGridSpec(
            num_scalar_prefetch=0,
            grid=(num_chunks, tiles_per_chunk),
            in_specs=[
                pl.BlockSpec((tile_rows, _LANES), in_map),
                pl.BlockSpec((tile_rows, _LANES), in_map),
            ],
            out_specs=pl.BlockSpec((_SUBLANES, _LANES), lambda p, i: (p, 0)),
        ),
        compiler_params=pltpu.CompilerParams(
            dimension_semantics=("parallel", "arbitrary"),
            vmem_limit_bytes=40 * 1024 * 1024,
        ),
    )(slab_pre, slab_true)

    return (jnp.sum(partials) + tail_sum) / jnp.float32(n_valid)


# ---------------------------------------------------------------------------
# Pure-JAX reference (mirrors the PyTorch forward, forward-order weight loop)
# ---------------------------------------------------------------------------
def _reference(y_pre, y_true):
    y_pre = y_pre.astype(jnp.float32)
    y_true = jnp.clip(y_true.astype(jnp.float32), 0.0, 1.0)
    w = y_true
    for th, wt in zip(THRESHOLDS, WEIGHTS):       # sequential, like PyTorch
        w = jnp.where(w < th, jnp.float32(wt), w)
    diff = y_pre - y_true
    loss1 = jnp.mean(w * diff * diff)
    loss2 = jnp.mean(w * jnp.abs(diff))
    return MSE_W * loss1 + MAE_W * loss2


if __name__ == "__main__":
    key = jax.random.PRNGKey(0)

    # --- primary small test (B, C, H, W) = (2, 4, 16, 16) --------------------
    k1, k2, key = jax.random.split(key, 3)
    B, C, H, W = 2, 4, 16, 16
    y_pre = jax.random.uniform(k1, (B, C, H, W), jnp.float32, minval=-0.1, maxval=1.1)
    y_true = jax.random.uniform(k2, (B, C, H, W), jnp.float32, minval=-0.1, maxval=1.1)
    out = bmsae_loss(y_pre, y_true)
    jax.block_until_ready(out)
    ref = _reference(y_pre, y_true)
    assert jnp.allclose(out, ref, rtol=1e-5, atol=1e-5), (out, ref)

    # --- multi-tile + 2-chunk + masked partial / clamped-duplicate blocks -----
    k3, k4, key = jax.random.split(key, 3)
    shape2 = (2, 5, 256, 250)                 # 640000 elems -> 5000 rows
    a = jax.random.uniform(k3, shape2, jnp.float32, minval=-0.1, maxval=1.1)
    b = jax.random.uniform(k4, shape2, jnp.float32, minval=-0.1, maxval=1.1)
    ref2 = _reference(a, b)
    out2a = bmsae_loss(a, b, tile_rows=512, num_chunks=2)   # 10 tiles, even split
    out2b = bmsae_loss(a, b, tile_rows=2048, num_chunks=2)  # 3 tiles -> dup step
    jax.block_until_ready((out2a, out2b))
    assert jnp.allclose(out2a, ref2, rtol=1e-4, atol=1e-5), (out2a, ref2)
    assert jnp.allclose(out2b, ref2, rtol=1e-4, atol=1e-5), (out2b, ref2)

    # --- ragged (non-1024-multiple) tail + bf16 passthrough --------------------
    k5, k6, key = jax.random.split(key, 3)
    shape3 = (3, 5, 17, 19)                   # 4845 elems -> 4096 kernel + 749 tail
    c = jax.random.uniform(k5, shape3, jnp.float32, minval=-0.1, maxval=1.1)
    d = jax.random.uniform(k6, shape3, jnp.float32, minval=-0.1, maxval=1.1)
    c_bf, d_bf = c.astype(jnp.bfloat16), d.astype(jnp.bfloat16)
    out3 = bmsae_loss(c_bf, d_bf, tile_rows=16)
    jax.block_until_ready(out3)
    ref3 = _reference(c_bf.astype(jnp.float32), d_bf.astype(jnp.float32))
    assert jnp.allclose(out3, ref3, rtol=1e-4, atol=1e-5), (out3, ref3)

    # --- tiny input (< 1024 elems): pure-JAX tail-only path --------------------
    k7, k8, key = jax.random.split(key, 3)
    e = jax.random.uniform(k7, (4, 10, 7), jnp.float32, minval=-0.1, maxval=1.1)
    f = jax.random.uniform(k8, (4, 10, 7), jnp.float32, minval=-0.1, maxval=1.1)
    out4 = bmsae_loss(e, f)
    jax.block_until_ready(out4)
    ref4 = _reference(e, f)
    assert jnp.allclose(out4, ref4, rtol=1e-5, atol=1e-5), (out4, ref4)

    print("KERNEL_OK")
</pallas_src>

<mosaic_0001>
module attributes {stable_mosaic.version = 11 : i64} {
  func.func @_bmsae_kernel(%arg0: i32, %arg1: i32, %arg2: memref<16x128xf32, #tpu.memory_space<vmem>>, %arg3: memref<16x128xf32, #tpu.memory_space<vmem>>, %arg4: memref<8x128xf32, #tpu.memory_space<vmem>>) attributes {dimension_semantics = [#tpu.dimension_semantics<parallel>, #tpu.dimension_semantics<arbitrary>], iteration_bounds = array<i64: 1, 1>, scalar_prefetch = 0 : i64, scratch_operands = 0 : i64, tpu.core_type = #tpu.core_type<tc>, window_params = [{transform_indices = @transform_0, window_bounds = array<i64: 16, 128>}, {transform_indices = @transform_1, window_bounds = array<i64: 16, 128>}, {transform_indices = @transform_2, window_bounds = array<i64: 8, 128>}]} {
    %c0_i32 = arith.constant 0 : i32
    %0 = arith.cmpi eq, %arg1, %c0_i32 : i32
    %1 = arith.extui %0 : i1 to i32
    %c0_i32_0 = arith.constant 0 : i32
    %2 = arith.cmpi ne, %1, %c0_i32_0 : i32
    scf.if %2 {
      %cst_27 = arith.constant 0.000000e+00 : f32
      %59 = vector.broadcast %cst_27 : f32 to vector<8x128xf32>
      %c0_28 = arith.constant 0 : index
      %c0_29 = arith.constant 0 : index
      %60 = vector.load %arg4[%c0_28, %c0_29] : memref<8x128xf32, #tpu.memory_space<vmem>>, vector<8x128xf32>
      tpu.vector_store %arg4[%c0_28, %c0_29], %59 {strides = array<i32>} : memref<8x128xf32, #tpu.memory_space<vmem>>, vector<8x128xf32>,
    } else {
    }
    %c0 = arith.constant 0 : index
    %c0_1 = arith.constant 0 : index
    %3 = vector.load %arg2[%c0, %c0_1] : memref<16x128xf32, #tpu.memory_space<vmem>>, vector<16x128xf32>
    %c0_2 = arith.constant 0 : index
    %c0_3 = arith.constant 0 : index
    %4 = vector.load %arg3[%c0_2, %c0_3] : memref<16x128xf32, #tpu.memory_space<vmem>>, vector<16x128xf32>
    %cst = arith.constant 0.000000e+00 : f32
    %cst_4 = arith.constant 1.000000e+00 : f32
    %5 = vector.broadcast %cst : f32 to vector<16x128xf32>
    %6 = arith.maximumf %5, %4 : vector<16x128xf32>
    %7 = vector.broadcast %cst_4 : f32 to vector<16x128xf32>
    %8 = arith.minimumf %7, %6 : vector<16x128xf32>
    %cst_5 = arith.constant 1.000000e+00 : f32
    %9 = vector.broadcast %cst_5 : f32 to vector<16x128xf32>
    %10 = arith.cmpf olt, %8, %9 : vector<16x128xf32>
    %cst_6 = arith.constant 3.000000e+01 : f32
    %11 = vector.broadcast %cst_6 : f32 to vector<16x128xf32>
    %12 = arith.select %10, %11, %8 : vector<16x128xi1>, vector<16x128xf32>
    %cst_7 = arith.constant 0.555555582 : f32
    %13 = vector.broadcast %cst_7 : f32 to vector<16x128xf32>
    %14 = arith.cmpf olt, %8, %13 : vector<16x128xf32>
    %cst_8 = arith.constant 2.500000e+01 : f32
    %15 = vector.broadcast %cst_8 : f32 to vector<16x128xf32>
    %16 = arith.select %14, %15, %12 : vector<16x128xi1>, vector<16x128xf32>
    %cst_9 = arith.constant 0.444444448 : f32
    %17 = vector.broadcast %cst_9 : f32 to vector<16x128xf32>
    %18 = arith.cmpf olt, %8, %17 : vector<16x128xf32>
    %cst_10 = arith.constant 2.000000e+01 : f32
    %19 = vector.broadcast %cst_10 : f32 to vector<16x128xf32>
    %20 = arith.select %18, %19, %16 : vector<16x128xi1>, vector<16x128xf32>
    %cst_11 = arith.constant 0.333333343 : f32
    %21 = vector.broadcast %cst_11 : f32 to vector<16x128xf32>
    %22 = arith.cmpf olt, %8, %21 : vector<16x128xf32>
    %cst_12 = arith.constant 1.500000e+01 : f32
    %23 = vector.broadcast %cst_12 : f32 to vector<16x128xf32>
    %24 = arith.select %22, %23, %20 : vector<16x128xi1>, vector<16x128xf32>
    %cst_13 = arith.constant 0.222222224 : f32
    %25 = vector.broadcast %cst_13 : f32 to vector<16x128xf32>
    %26 = arith.cmpf olt, %8, %25 : vector<16x128xf32>
    %cst_14 = arith.constant 1.000000e+01 : f32
    %27 = vector.broadcast %cst_14 : f32 to vector<16x128xf32>
    %28 = arith.select %26, %27, %24 : vector<16x128xi1>, vector<16x128xf32>
    %cst_15 = arith.constant 0.111111112 : f32
    %29 = vector.broadcast %cst_15 : f32 to vector<16x128xf32>
    %30 = arith.cmpf olt, %8, %29 : vector<16x128xf32>
    %cst_16 = arith.constant 5.000000e+00 : f32
    %31 = vector.broadcast %cst_16 : f32 to vector<16x128xf32>
    %32 = arith.select %30, %31, %28 : vector<16x128xi1>, vector<16x128xf32>
    %cst_17 = arith.constant 0.055555556 : f32
    %33 = vector.broadcast %cst_17 : f32 to vector<16x128xf32>
    %34 = arith.cmpf olt, %8, %33 : vector<16x128xf32>
    %cst_18 = arith.constant 2.000000e+00 : f32
    %35 = vector.broadcast %cst_18 : f32 to vector<16x128xf32>
    %36 = arith.select %34, %35, %32 : vector<16x128xi1>, vector<16x128xf32>
    %cst_19 = arith.constant 0.0111111114 : f32
    %37 = vector.broadcast %cst_19 : f32 to vector<16x128xf32>
    %38 = arith.cmpf olt, %8, %37 : vector<16x128xf32>
    %cst_20 = arith.constant 1.000000e+00 : f32
    %39 = vector.broadcast %cst_20 : f32 to vector<16x128xf32>
    %40 = arith.select %38, %39, %36 : vector<16x128xi1>, vector<16x128xf32>
    %41 = arith.subf %3, %8 : vector<16x128xf32>
    %42 = math.absf %41 : vector<16x128xf32>
    %43 = arith.mulf %40, %42 : vector<16x128xf32>
    %cst_21 = arith.constant 1.000000e+00 : f32
    %44 = vector.broadcast %cst_21 : f32 to vector<16x128xf32>
    %45 = arith.mulf %44, %42 : vector<16x128xf32>
    %cst_22 = arith.constant 1.000000e+00 : f32
    %46 = vector.broadcast %cst_22 : f32 to vector<16x128xf32>
    %47 = arith.addf %45, %46 : vector<16x128xf32>
    %48 = arith.mulf %43, %47 : vector<16x128xf32>
    %c1_i32 = arith.constant 1 : i32
    %49 = arith.muli %arg0, %c1_i32 : i32
    %50 = arith.addi %49, %arg1 : i32
    %c16_i32 = arith.constant 16 : i32
    %51 = arith.muli %50, %c16_i32 : i32
    %c16_i32_23 = arith.constant 16 : i32
    %52 = arith.addi %51, %c16_i32_23 : i32
    %c16_i32_24 = arith.constant 16 : i32
    %53 = arith.cmpi sgt, %52, %c16_i32_24 : i32
    %true = arith.constant true
    %54 = arith.xori %53, %true : i1
    %55 = arith.extui %54 : i1 to i32
    %c0_i32_25 = arith.constant 0 : i32
    %56 = arith.cmpi ne, %55, %c0_i32_25 : i32
    scf.if %56 {
      %c0_27 = arith.constant 0 : index
      %c0_28 = arith.constant 0 : index
      %59 = vector.load %arg4[%c0_27, %c0_28] : memref<8x128xf32, #tpu.memory_space<vmem>>, vector<8x128xf32>
      %60 = vector.shape_cast %48 : vector<16x128xf32> to vector<2x8x128xf32>
      %cst_29 = arith.constant dense<0.000000e+00> : vector<8x128xf32>
      %61 = vector.multi_reduction <add>, %60, %cst_29 [0] : vector<2x8x128xf32> to vector<8x128xf32>
      %62 = arith.addf %59, %61 : vector<8x128xf32>
      %c0_30 = arith.constant 0 : index
      %c0_31 = arith.constant 0 : index
      %63 = vector.load %arg4[%c0_30, %c0_31] : memref<8x128xf32, #tpu.memory_space<vmem>>, vector<8x128xf32>
      tpu.vector_store %arg4[%c0_30, %c0_31], %62 {strides = array<i32>} : memref<8x128xf32, #tpu.memory_space<vmem>>, vector<8x128xf32>,
    } else {
    }
    %57 = arith.extui %53 : i1 to i32
    %c0_i32_26 = arith.constant 0 : i32
    %58 = arith.cmpi ne, %57, %c0_i32_26 : i32
    scf.if %58 {
      %59 = tpu.iota {dimensions = array<i32: 0>} : vector<16x128xi32>
      %60 = vector.broadcast %51 : i32 to vector<16x128xi32>
      %61 = arith.addi %60, %59 : vector<16x128xi32>
      %c16_i32_27 = arith.constant 16 : i32
      %62 = vector.broadcast %c16_i32_27 : i32 to vector<16x128xi32>
      %63 = arith.cmpi slt, %61, %62 : vector<16x128xi32>
      %cst_28 = arith.constant 0.000000e+00 : f32
      %64 = vector.broadcast %cst_28 : f32 to vector<16x128xf32>
      %65 = arith.select %63, %48, %64 : vector<16x128xi1>, vector<16x128xf32>
      %c0_29 = arith.constant 0 : index
      %c0_30 = arith.constant 0 : index
      %66 = vector.load %arg4[%c0_29, %c0_30] : memref<8x128xf32, #tpu.memory_space<vmem>>, vector<8x128xf32>
      %67 = vector.shape_cast %65 : vector<16x128xf32> to vector<2x8x128xf32>
      %cst_31 = arith.constant dense<0.000000e+00> : vector<8x128xf32>
      %68 = vector.multi_reduction <add>, %67, %cst_31 [0] : vector<2x8x128xf32> to vector<8x128xf32>
      %69 = arith.addf %66, %68 : vector<8x128xf32>
      %c0_32 = arith.constant 0 : index
      %c0_33 = arith.constant 0 : index
      %70 = vector.load %arg4[%c0_32, %c0_33] : memref<8x128xf32, #tpu.memory_space<vmem>>, vector<8x128xf32>
      tpu.vector_store %arg4[%c0_32, %c0_33], %69 {strides = array<i32>} : memref<8x128xf32, #tpu.memory_space<vmem>>, vector<8x128xf32>,
    } else {
    }
    return
  }
  func.func @transform_0(%arg0: i32, %arg1: i32) -> (i32, i32) {
    %c1_i32 = arith.constant 1 : i32
    %0 = arith.muli %arg0, %c1_i32 : i32
    %1 = arith.addi %0, %arg1 : i32
    %c0_i32 = arith.constant 0 : i32
    %2 = arith.minsi %1, %c0_i32 : i32
    %c0_i32_0 = arith.constant 0 : i32
    %c0_i32_1 = arith.constant 0 : i32
    return %2, %c0_i32_0 : i32, i32
  }
  func.func @transform_1(%arg0: i32, %arg1: i32) -> (i32, i32) {
    %c1_i32 = arith.constant 1 : i32
    %0 = arith.muli %arg0, %c1_i32 : i32
    %1 = arith.addi %0, %arg1 : i32
    %c0_i32 = arith.constant 0 : i32
    %2 = arith.minsi %1, %c0_i32 : i32
    %c0_i32_0 = arith.constant 0 : i32
    %c0_i32_1 = arith.constant 0 : i32
    return %2, %c0_i32_0 : i32, i32
  }
  func.func @transform_2(%arg0: i32, %arg1: i32) -> (i32, i32) {
    %c0_i32 = arith.constant 0 : i32
    %c0_i32_0 = arith.constant 0 : i32
    return %arg0, %c0_i32 : i32, i32
  }
}

</mosaic_0001>

<bundles_post_ra>
// kernel: tpu_custom_call.1
= control target key start
LH: loop header
LB: loop body
LE: loop exit
PB: predicated region body
PF: predicated region fallthrough
CT: control target
= control target key end

     0   :  { %7 = vsyncpa [#allocation3], 0  ;;  %s265_s0 = inlined_call_operand.hbm [shape: f32[16,128], index: 0, kind: input, shape index: {}]   ;;  %s266_s1 = inlined_call_operand.hbm [shape: f32[16,128], index: 1, kind: input, shape index: {}]   ;;  %s267_s2 = inlined_call_operand.hbm [shape: f32[8,128], index: 2, kind: output, shape index: {}]  }
   0x1   :  { %8 = vsyncpa [#allocation6], 0 }
   0x2   :  { %9 = vsyncpa [#allocation4], 0  ;;  %s236_s9 = smov [#allocation2]  }
   0x3   :  { %s21_s10 = sshll.u32 %s236_s9, 4  ;;  %s22_s10 = int_to_ptr.vmem [resolvable:$true] %s21_s10 }
   0x4   :  { %s178_s11 = scalar_lea.vmem %s22_s10, 256  ;;  %p183_p1 = scmp.lt.s32.totalorder %s22_s10, %s22_s10 }
   0x5   :  { %p179_p0 = scmp.ne.s32.totalorder %s22_s10, %s178_s11  ;;  %p184_p2 = scmp.lt.s32.totalorder %s178_s11, %s178_s11 }
   0x7   :  { %p185_p3 = por %p184_p2, %p183_p1 }
   0x9   :  { %p186_p4 = pnand %p185_p3, %p179_p0 }
   0xb   :  { %189 = shalt.err (!%p186_p4)
}
   0xc   :  { %s237_s12 = smov 128   ;;  %s238_s13 = smov 8  }
   0xd   :  { %27 = dma.hbm_to_vmem [thread:$0]  %s265_s0, 256, %s22_s10, [#allocation3], %s237_s12, %s237_s12, %s238_s13  }
   0xe   :  { %s239_s16 = smov [#allocation5]  }
   0xf   :  { %s39_s17 = sshll.u32 %s239_s16, 4  ;;  %s40_s17 = int_to_ptr.vmem [resolvable:$true] %s39_s17 }
  0x10   :  { %s198_s18 = scalar_lea.vmem %s40_s17, 256  ;;  %p203_p6 = scmp.lt.s32.totalorder %s40_s17, %s40_s17 }
  0x11   :  { %p199_p5 = scmp.ne.s32.totalorder %s40_s17, %s198_s18  ;;  %p204_p7 = scmp.lt.s32.totalorder %s198_s18, %s198_s18 }
  0x13   :  { %p205_p8 = por %p204_p7, %p203_p6 }
  0x15   :  { %p206_p9 = pnand %p205_p8, %p199_p5 }
  0x17   :  { %209 = shalt.err (!%p206_p9)
}
  0x18   :  { %45 = dma.hbm_to_vmem [thread:$0]  %s266_s1, 256, %s40_s17, [#allocation6], %s237_s12, %s237_s12, %s238_s13  }
  0x19   :  { %230 = dma.done.wait [#allocation3], 256  }
  0x1a   :  { %231 = vsyncadd [#allocation3], 4294967040 }
  0x1b   :  { %232 = dma.done.wait [#allocation6], 256  }
  0x1c   :  { %233 = vsyncadd [#allocation6], 4294967040  ;;  %v67_v0 = vld [vmem:[#allocation5] sm:$0xff]  ;;  %v68_v1 = vld [vmem:[#allocation5 + $0x8] sm:$0xff]  ;;  %s240_s0 = smov [#allocation7]  }
  0x1d   :  { %v69_v2 = vmax.f32 %v67_v0, 0.0  ;;  %v65_v3 = vld [vmem:[#allocation2] sm:$0xff]  ;;  %v70_v4 = vmax.f32 %v68_v1, 0.0  ;;  %v66_v9 = vld [vmem:[#allocation2 + $0x8] sm:$0xff]  ;;  %s150_s1 = sshll.u32 %s240_s0, 4  ;;  %s151_s1 = int_to_ptr.vmem [resolvable:$true] %s150_s1 }
  0x1e   :  { %s210_s21 = scalar_lea.vmem %s151_s1, 128  ;;  %p215_p11 = scmp.lt.s32.totalorder %s151_s1, %s151_s1 }
  0x1f   :  { %v71_v5 = vmin.f32 %v69_v2, 1.0  ;;  %v72_v6 = vmin.f32 %v70_v4, 1.0  ;;  %p211_p10 = scmp.ne.s32.totalorder %s151_s1, %s210_s21  ;;  %p216_p12 = scmp.lt.s32.totalorder %s210_s21, %s210_s21 }
  0x21   :  { %vm73_vm0 = vcmp.lt.f32.partialorder %v71_v5, 1.0  ;;  %vm77_vm1 = vcmp.lt.f32.partialorder %v71_v5, 0.5555556  ;;  %vm81_vm2 = vcmp.lt.f32.partialorder %v71_v5, 0.44444445  ;;  %v105_v7 = vsub.f32 %v65_v3, %v71_v5  ;;  %p217_p13 = por %p216_p12, %p215_p11 }
  0x22   :  { %vm74_vm3 = vcmp.lt.f32.partialorder %v72_v6, 1.0  ;;  %v75_v8 = vsel %vm73_vm0, 30.0, %v71_v5  ;;  %vm78_vm4 = vcmp.lt.f32.partialorder %v72_v6, 0.5555556  ;;  %vm82_vm5 = vcmp.lt.f32.partialorder %v72_v6, 0.44444445 }
  0x23   :  { %v76_v10 = vsel %vm74_vm3, 30.0, %v72_v6  ;;  %v79_v11 = vsel %vm77_vm1, 25.0, %v75_v8  ;;  %vm85_vm6 = vcmp.lt.f32.partialorder %v71_v5, 0.33333334  ;;  %vm86_vm7 = vcmp.lt.f32.partialorder %v72_v6, 0.33333334  ;;  %p218_p0 = pnand %p217_p13, %p211_p10 }
  0x24   :  { %v80_v12 = vsel %vm78_vm4, 25.0, %v76_v10  ;;  %v83_v13 = vsel %vm81_vm2, 20.0, %v79_v11  ;;  %vm89_vm8 = vcmp.lt.f32.partialorder %v71_v5, 0.22222222  ;;  %vm90_vm9 = vcmp.lt.f32.partialorder %v72_v6, 0.22222222 }
  0x25   :  { %v84_v14 = vsel %vm82_vm5, 20.0, %v80_v12  ;;  %v87_v15 = vsel %vm85_vm6, 15.0, %v83_v13  ;;  %vm93_vm10 = vcmp.lt.f32.partialorder %v71_v5, 0.11111111  ;;  %vm94_vm11 = vcmp.lt.f32.partialorder %v72_v6, 0.11111111 }
  0x26   :  { %v88_v16 = vsel %vm86_vm7, 15.0, %v84_v14  ;;  %v91_v17 = vsel %vm89_vm8, 10.0, %v87_v15  ;;  %vm97_vm12 = vcmp.lt.f32.partialorder %v71_v5, 0.055555556  ;;  %vm98_vm13 = vcmp.lt.f32.partialorder %v72_v6, 0.055555556 }
  0x27   :  { %v92_v18 = vsel %vm90_vm9, 10.0, %v88_v16  ;;  %v95_v19 = vsel %vm93_vm10, 5.0, %v91_v17  ;;  %vm101_vm14 = vcmp.lt.f32.partialorder %v71_v5, 0.011111111  ;;  %vm102_vm15 = vcmp.lt.f32.partialorder %v72_v6, 0.011111111 }
  0x28   :  { %v96_v20 = vsel %vm94_vm11, 5.0, %v92_v18  ;;  %v99_v21 = vsel %vm97_vm12, 2.0, %v95_v19  ;;  %v106_v22 = vsub.f32 %v66_v9, %v72_v6  ;;  %v107_v23 = vand.u32 2147483647, %v105_v7 }
  0x29   :  { %v100_v24 = vsel %vm98_vm13, 2.0, %v96_v20  ;;  %v103_v25 = vsel %vm101_vm14, 1.0, %v99_v21 }
  0x2a   :  { %v104_v26 = vsel %vm102_vm15, 1.0, %v100_v24  ;;  %v108_v27 = vand.u32 2147483647, %v106_v22  ;;  %v109_v28 = vmul.f32 %v107_v23, %v103_v25  ;;  %v111_v29 = vadd.f32 1.0, %v107_v23 }
  0x2c   :  { %v110_v30 = vmul.f32 %v108_v27, %v104_v26  ;;  %v112_v31 = vadd.f32 1.0, %v108_v27  ;;  %v113_v32 = vmul.f32 %v111_v29, %v109_v28 }
  0x2e   :  { %v114_v33 = vmul.f32 %v112_v31, %v110_v30 }
  0x30   :  { %v124_v34 = vadd.f32 %v114_v33, %v113_v32 }
  0x32   :  { %126 = vst [vmem:[#allocation7] sm:$0xff] %v124_v34 }
  0x33   :  { %221 = shalt.err (!%p218_p0)
}
  0x34   :  { %153 = dma.vmem_to_hbm [thread:$0]  %s151_s1, 128, %s267_s2, [#allocation4]  }
  0x35   :  { %234 = dma.done.wait [#allocation4], 128  }
  0x36   :  { %235 = vsyncadd [#allocation4], 4294967168 }
  0x37   :  { %157 = vsyncpa [#allocation3], 1 }
  0x38   :  { %158 = vsyncpa [#allocation6], 1 }
  0x39   :  { %159 = vsyncpa [#allocation4], 1 }

</bundles_post_ra>
